<compile_context>
chip_gen: v6e
topology: v6e:2x2x1
jax: 0.10.0
libtpu: 0.0.40
codegen_flags: <defaults>
</compile_context>

<pallas_src>
import jax
import jax.numpy as jnp
from jax.experimental import pallas as pl
from jax.experimental.pallas import tpu as pltpu

EPS_BN = 1e-5       # nn.BatchNorm1d default eps
EPS_NORM = 1e-12    # F.normalize default eps


# ---------------- in-kernel building blocks ----------------

def _bf16_dot(x, w):
    # MXU is bf16-native on v5e/v6e/v7x; cast operands at the dot only and
    # accumulate in f32.
    return jnp.dot(x.astype(jnp.bfloat16), w, preferred_element_type=jnp.float32)


def _batchnorm1d_per_view(h, gamma, beta, n_views=2):
    # nn.BatchNorm1d (training mode, biased batch variance), applied per view.
    # h is [n_views*B, D]; BYOL computes stats per view, so reshape to
    # [n_views, B, D] (free view when B is a sublane multiple) and reduce over
    # axis=1.  Single pass over h: var = E[x^2] - mean^2.
    two_b, d = h.shape
    b = two_b // n_views
    h3 = h.reshape(n_views, b, d)
    mean = jnp.mean(h3, axis=1, keepdims=True)
    mean_sq = jnp.mean(h3 * h3, axis=1, keepdims=True)
    var = mean_sq - mean * mean
    h_hat = (h3 - mean) * jax.lax.rsqrt(var + EPS_BN)
    return (h_hat * gamma + beta).reshape(two_b, d)


def _mlp(x, w_ref, wi, vec_ref, vi):
    # Linear -> BatchNorm1d -> ReLU -> Linear (projection_MLP / prediction_MLP).
    # Weights are rows wi, wi+1 of the packed bf16 weight tensor; bias / gamma /
    # beta / bias vectors are rows vi..vi+3 of the packed f32 vector tensor.
    h = _bf16_dot(x, w_ref[wi]) + vec_ref[vi:vi + 1, :]
    h = _batchnorm1d_per_view(h, vec_ref[vi + 1:vi + 2, :],
                              vec_ref[vi + 2:vi + 3, :])
    h = jnp.maximum(h, 0.0)
    return _bf16_dot(h, w_ref[wi + 1]) + vec_ref[vi + 3:vi + 4, :]


def _l2_normalize(x):
    # F.normalize: x / max(||x||, eps)  ==  x * rsqrt(max(||x||^2, eps^2))
    sumsq = jnp.sum(x * x, axis=-1, keepdims=True)
    return x * jax.lax.rsqrt(jnp.maximum(sumsq, EPS_NORM * EPS_NORM))


# ---------------- the kernel ----------------

def byol_kernel(x_ref, wbx_ref, w_ref, vec_ref, loss_ref):
    # x_ref  : [2B, KP]     f32  globally-average-pooled features, both views
    #                            stacked, zero-padded on K (exact).
    # wbx_ref: [KP, 2*FEAT] bf16 online|target backbone weights fused on N.
    # w_ref  : [6, D, D]    bf16 packed MLP weights
    #                            (proj w1,w2 | pred w1,w2 | target-proj w1,w2).
    # vec_ref: [14, D]      f32  packed vectors (bb, tbb, then per-MLP
    #                            b1, gamma, beta, b2 for proj / pred / t-proj).
    # TODO(synk): resnet18 backbone is not defined in the source module; a
    # synthetic backbone (global average pool + linear to output_dim) is used,
    # with the pool hoisted to the wrapper per the perf review.
    x = x_ref[...]

    # Backbone for both views AND both encoders in one MXU matmul (online and
    # target weights concatenated along N; split on a 128-lane boundary).
    f_all = _bf16_dot(x, wbx_ref[...])            # [2B, 2*FEAT]
    feat = f_all.shape[-1] // 2
    f = f_all[:, :feat] + vec_ref[0:1, :]         # online backbone features
    tf = f_all[:, feat:] + vec_ref[1:2, :]        # target backbone features

    # online encoder = backbone + projection_MLP, then predictor (views batched)
    z = _mlp(f, w_ref, 0, vec_ref, 2)             # [2B, D]
    p = _mlp(z, w_ref, 2, vec_ref, 6)             # [2B, D]
    # target encoder (torch.no_grad / detach: forward-only here)
    t = _mlp(tf, w_ref, 4, vec_ref, 10)           # [2B, D]

    pn = _l2_normalize(p)
    tn = _l2_normalize(t)
    b = pn.shape[0] // 2
    p1, p2 = pn[:b], pn[b:]
    t1, t2 = tn[:b], tn[b:]

    # regression_loss(x, y) = 2 - 2 * <normalize(x), normalize(y)>
    loss_one = 2.0 - 2.0 * jnp.sum(p1 * t2, axis=-1, keepdims=True)
    loss_two = 2.0 - 2.0 * jnp.sum(p2 * t1, axis=-1, keepdims=True)
    loss_ref[...] = loss_one + loss_two


# ---------------- wrapper ----------------

def byol_forward(x1, x2, params):
    (wb, bb, pw1, pb1, pg, pbt, pw2, pb2,
     qw1, qb1, qg, qbt, qw2, qb2,
     twb, tbb, tpw1, tpb1, tpg, tpbt, tpw2, tpb2) = params

    B, C, H, W = x1.shape
    hw = H * W

    # Global average pool in the wrapper (trivial XLA reduce) and stack both
    # views so every shared-weight layer runs as one fat matmul in the kernel.
    x = jnp.concatenate([x1.reshape(B, C, hw).mean(-1),
                         x2.reshape(B, C, hw).mean(-1)], axis=0)    # [2B, C]

    # Fused online|target backbone weight at its native size, zero-padded on
    # the contraction dim up to a 128 multiple so the in-kernel dot uses
    # vanilla MXU-aligned shapes (exact: padded rows see padded zeros).
    kp = ((C + 127) // 128) * 128
    x = jnp.pad(x, ((0, 0), (0, kp - C)))                           # [2B, KP]
    wbx = jnp.pad(jnp.concatenate([wb, twb], axis=1),
                  ((0, kp - C), (0, 0))).astype(jnp.bfloat16)       # [KP, 2*FEAT]

    # Pack parameters: six DxD MLP weights into one bf16 tensor and fourteen
    # (1,D) vectors into one f32 tensor -> 4 input DMAs total.  (All hidden /
    # output dims are equal in this config, which the packing requires; at
    # real BYOL sizes unequal-dim weights stay as separate inputs.)
    w_pack = jnp.stack([pw1, pw2, qw1, qw2, tpw1, tpw2]).astype(jnp.bfloat16)
    vec_pack = jnp.concatenate([bb, tbb,
                                pb1, pg, pbt, pb2,
                                qb1, qg, qbt, qb2,
                                tpb1, tpg, tpbt, tpb2], axis=0)     # [14, D]

    inputs = [x, wbx, w_pack, vec_pack]
    vmem = pl.BlockSpec(memory_space=pltpu.MemorySpace.VMEM)
    fn = pl.pallas_call(
        byol_kernel,
        out_shape=jax.ShapeDtypeStruct((B, 1), jnp.float32),
        in_specs=[vmem] * len(inputs),
        out_specs=vmem,
    )
    loss = fn(*inputs)
    return loss[:, 0]   # per-sample loss, shape [B], matches torch 'loss'


# ---------------- deterministic parameter init ----------------

def init_params(key, C, FEAT, P_HID, P_OUT, Q_HID, Q_OUT):
    ks = jax.random.split(key, 8)
    f32 = jnp.float32

    def w(k, shape):
        return jax.random.normal(k, shape, f32) * 0.05

    def mlp_params(k1, k2, din, dh, dout):
        return [w(k1, (din, dh)), jnp.zeros((1, dh), f32),
                jnp.ones((1, dh), f32), jnp.zeros((1, dh), f32),
                w(k2, (dh, dout)), jnp.zeros((1, dout), f32)]

    wb = w(ks[0], (C, FEAT)); bb = jnp.zeros((1, FEAT), f32)
    online = ([wb, bb]
              + mlp_params(ks[1], ks[2], FEAT, P_HID, P_OUT)    # projector
              + mlp_params(ks[3], ks[4], P_OUT, Q_HID, Q_OUT))  # predictor

    # Target encoder holds its own parameter copies (deepcopy at init, then
    # momentum-updated).  Distinct values are used here so the independent
    # target path is actually exercised by the numerical check.
    twb = w(ks[5], (C, FEAT)); tbb = jnp.zeros((1, FEAT), f32)
    target = [twb, tbb] + mlp_params(ks[6], ks[7], FEAT, P_HID, P_OUT)
    return online + target


# ---------------- pure-JAX reference for verification ----------------

def ref_forward(x1, x2, params):
    (wb, bb, pw1, pb1, pg, pbt, pw2, pb2,
     qw1, qb1, qg, qbt, qw2, qb2,
     twb, tbb, tpw1, tpb1, tpg, tpbt, tpw2, tpb2) = params

    def dot(a, b):
        return jnp.dot(a, b, preferred_element_type=jnp.float32,
                       precision=jax.lax.Precision.HIGHEST)

    def backbone(x, w, b):
        return dot(jnp.mean(x, axis=(2, 3)), w) + b

    def bn(h, g, bt):
        m = h.mean(0, keepdims=True)
        v = ((h - m) ** 2).mean(0, keepdims=True)
        return (h - m) / jnp.sqrt(v + EPS_BN) * g + bt

    def mlp(x, w1, b1, g, bt, w2, b2):
        h = jnp.maximum(bn(dot(x, w1) + b1, g, bt), 0.0)
        return dot(h, w2) + b2

    def norm(x):
        n = jnp.sqrt((x * x).sum(1, keepdims=True))
        return x / jnp.maximum(n, EPS_NORM)

    z1 = mlp(backbone(x1, wb, bb), pw1, pb1, pg, pbt, pw2, pb2)
    z2 = mlp(backbone(x2, wb, bb), pw1, pb1, pg, pbt, pw2, pb2)
    p1 = mlp(z1, qw1, qb1, qg, qbt, qw2, qb2)
    p2 = mlp(z2, qw1, qb1, qg, qbt, qw2, qb2)
    t1 = mlp(backbone(x1, twb, tbb), tpw1, tpb1, tpg, tpbt, tpw2, tpb2)
    t2 = mlp(backbone(x2, twb, tbb), tpw1, tpb1, tpg, tpbt, tpw2, tpb2)
    l1 = 2.0 - 2.0 * (norm(p1) * norm(t2)).sum(-1)
    l2 = 2.0 - 2.0 * (norm(p2) * norm(t1)).sum(-1)
    return l1 + l2


if __name__ == "__main__":
    B, C, H, W = 8, 4, 16, 16              # B multiple of 8 -> free BN reshape
    FEAT, P_HID, P_OUT = 128, 128, 128     # backbone.output_dim, projector dims
    Q_HID, Q_OUT = 128, 128                # predictor dims (scaled from 512/2048)

    key = jax.random.PRNGKey(0)
    k1, k2, kp = jax.random.split(key, 3)
    x1 = jax.random.normal(k1, (B, C, H, W), jnp.float32)
    x2 = jax.random.normal(k2, (B, C, H, W), jnp.float32)
    params = init_params(kp, C, FEAT, P_HID, P_OUT, Q_HID, Q_OUT)

    loss = byol_forward(x1, x2, params)
    jax.block_until_ready(loss)

    ref = ref_forward(x1, x2, params)
    assert loss.shape == (B,), loss.shape
    assert jnp.allclose(loss, ref, rtol=5e-2, atol=5e-2), (loss, ref)
    print("KERNEL_OK")
</pallas_src>

<mosaic_0001>
module attributes {stable_mosaic.version = 11 : i64} {
  func.func @byol_kernel(%arg0: memref<16x128xf32, #tpu.memory_space<vmem>>, %arg1: memref<128x256xbf16, #tpu.memory_space<vmem>>, %arg2: memref<6x128x128xbf16, #tpu.memory_space<vmem>>, %arg3: memref<14x128xf32, #tpu.memory_space<vmem>>, %arg4: memref<8x1xf32, #tpu.memory_space<vmem>>) attributes {dimension_semantics = [], scalar_prefetch = 0 : i64, scratch_operands = 0 : i64, tpu.core_type = #tpu.core_type<tc>} {
    %c0 = arith.constant 0 : index
    %c0_0 = arith.constant 0 : index
    %0 = vector.load %arg0[%c0, %c0_0] : memref<16x128xf32, #tpu.memory_space<vmem>>, vector<16x128xf32>
    %c0_1 = arith.constant 0 : index
    %c0_2 = arith.constant 0 : index
    %1 = vector.load %arg1[%c0_1, %c0_2] : memref<128x256xbf16, #tpu.memory_space<vmem>>, vector<128x256xbf16>
    %2 = arith.truncf %0 : vector<16x128xf32> to vector<16x128xbf16>
    %cst = arith.constant dense<0.000000e+00> : vector<16x256xf32>
    %3 = tpu.matmul %2, %1, %cst {dimension_numbers = #tpu.dot_dimension_numbers<[1], [0], [0], [1], [0, 0, 1, 1], [], []>} : vector<16x128xbf16>, vector<128x256xbf16>, vector<16x256xf32> -> vector<16x256xf32>
    %4 = vector.extract_strided_slice %3 {offsets = [0, 0], sizes = [16, 128], strides = [1, 1]} : vector<16x256xf32> to vector<16x128xf32>
    %c0_3 = arith.constant 0 : index
    %c0_4 = arith.constant 0 : index
    %5 = vector.load %arg3[%c0_3, %c0_4] : memref<14x128xf32, #tpu.memory_space<vmem>>, vector<1x128xf32>
    %6 = vector.broadcast %5 : vector<1x128xf32> to vector<16x128xf32>
    %7 = arith.addf %4, %6 : vector<16x128xf32>
    %8 = vector.extract_strided_slice %3 {offsets = [0, 128], sizes = [16, 128], strides = [1, 1]} : vector<16x256xf32> to vector<16x128xf32>
    %c1 = arith.constant 1 : index
    %c0_5 = arith.constant 0 : index
    %9 = vector.load %arg3[%c1, %c0_5] : memref<14x128xf32, #tpu.memory_space<vmem>>, vector<1x128xf32>
    %10 = vector.broadcast %9 : vector<1x128xf32> to vector<16x128xf32>
    %11 = arith.addf %8, %10 : vector<16x128xf32>
    %c0_6 = arith.constant 0 : index
    %c0_7 = arith.constant 0 : index
    %c0_8 = arith.constant 0 : index
    %12 = vector.load %arg2[%c0_6, %c0_7, %c0_8] : memref<6x128x128xbf16, #tpu.memory_space<vmem>>, vector<1x128x128xbf16>
    %13 = vector.shape_cast %12 : vector<1x128x128xbf16> to vector<128x128xbf16>
    %14 = arith.truncf %7 : vector<16x128xf32> to vector<16x128xbf16>
    %cst_9 = arith.constant dense<0.000000e+00> : vector<16x128xf32>
    %15 = tpu.matmul %14, %13, %cst_9 {dimension_numbers = #tpu.dot_dimension_numbers<[1], [0], [0], [1], [0, 0, 1, 1], [], []>} : vector<16x128xbf16>, vector<128x128xbf16>, vector<16x128xf32> -> vector<16x128xf32>
    %c2 = arith.constant 2 : index
    %c0_10 = arith.constant 0 : index
    %16 = vector.load %arg3[%c2, %c0_10] : memref<14x128xf32, #tpu.memory_space<vmem>>, vector<1x128xf32>
    %17 = vector.broadcast %16 : vector<1x128xf32> to vector<16x128xf32>
    %18 = arith.addf %15, %17 : vector<16x128xf32>
    %c3 = arith.constant 3 : index
    %c0_11 = arith.constant 0 : index
    %19 = vector.load %arg3[%c3, %c0_11] : memref<14x128xf32, #tpu.memory_space<vmem>>, vector<1x128xf32>
    %c4 = arith.constant 4 : index
    %c0_12 = arith.constant 0 : index
    %20 = vector.load %arg3[%c4, %c0_12] : memref<14x128xf32, #tpu.memory_space<vmem>>, vector<1x128xf32>
    %21 = vector.shape_cast %18 : vector<16x128xf32> to vector<2x8x128xf32>
    %cst_13 = arith.constant dense<0.000000e+00> : vector<2x128xf32>
    %22 = vector.multi_reduction <add>, %21, %cst_13 [1] : vector<2x8x128xf32> to vector<2x128xf32>
    %23 = vector.shape_cast %22 : vector<2x128xf32> to vector<2x1x128xf32>
    %cst_14 = arith.constant 8.000000e+00 : f32
    %24 = vector.broadcast %cst_14 : f32 to vector<2x1x128xf32>
    %25 = arith.divf %23, %24 : vector<2x1x128xf32>
    %26 = arith.mulf %21, %21 : vector<2x8x128xf32>
    %cst_15 = arith.constant dense<0.000000e+00> : vector<2x128xf32>
    %27 = vector.multi_reduction <add>, %26, %cst_15 [1] : vector<2x8x128xf32> to vector<2x128xf32>
    %28 = vector.shape_cast %27 : vector<2x128xf32> to vector<2x1x128xf32>
    %cst_16 = arith.constant 8.000000e+00 : f32
    %29 = vector.broadcast %cst_16 : f32 to vector<2x1x128xf32>
    %30 = arith.divf %28, %29 : vector<2x1x128xf32>
    %31 = arith.mulf %25, %25 : vector<2x1x128xf32>
    %32 = arith.subf %30, %31 : vector<2x1x128xf32>
    %33 = vector.broadcast %25 : vector<2x1x128xf32> to vector<2x8x128xf32>
    %34 = arith.subf %21, %33 : vector<2x8x128xf32>
    %cst_17 = arith.constant 9.99999974E-6 : f32
    %35 = vector.broadcast %cst_17 : f32 to vector<2x1x128xf32>
    %36 = arith.addf %32, %35 : vector<2x1x128xf32>
    %37 = math.rsqrt %36 : vector<2x1x128xf32>
    %38 = vector.broadcast %37 : vector<2x1x128xf32> to vector<2x8x128xf32>
    %39 = arith.mulf %34, %38 : vector<2x8x128xf32>
    %40 = vector.shape_cast %19 : vector<1x128xf32> to vector<1x1x128xf32>
    %41 = vector.broadcast %40 : vector<1x1x128xf32> to vector<2x8x128xf32>
    %42 = arith.mulf %39, %41 : vector<2x8x128xf32>
    %43 = vector.shape_cast %20 : vector<1x128xf32> to vector<1x1x128xf32>
    %44 = vector.broadcast %43 : vector<1x1x128xf32> to vector<2x8x128xf32>
    %45 = arith.addf %42, %44 : vector<2x8x128xf32>
    %46 = vector.shape_cast %45 : vector<2x8x128xf32> to vector<16x128xf32>
    %cst_18 = arith.constant 0.000000e+00 : f32
    %47 = vector.broadcast %cst_18 : f32 to vector<16x128xf32>
    %48 = arith.maximumf %46, %47 : vector<16x128xf32>
    %c1_19 = arith.constant 1 : index
    %c0_20 = arith.constant 0 : index
    %c0_21 = arith.constant 0 : index
    %49 = vector.load %arg2[%c1_19, %c0_20, %c0_21] : memref<6x128x128xbf16, #tpu.memory_space<vmem>>, vector<1x128x128xbf16>
    %50 = vector.shape_cast %49 : vector<1x128x128xbf16> to vector<128x128xbf16>
    %51 = arith.truncf %48 : vector<16x128xf32> to vector<16x128xbf16>
    %cst_22 = arith.constant dense<0.000000e+00> : vector<16x128xf32>
    %52 = tpu.matmul %51, %50, %cst_22 {dimension_numbers = #tpu.dot_dimension_numbers<[1], [0], [0], [1], [0, 0, 1, 1], [], []>} : vector<16x128xbf16>, vector<128x128xbf16>, vector<16x128xf32> -> vector<16x128xf32>
    %c5 = arith.constant 5 : index
    %c0_23 = arith.constant 0 : index
    %53 = vector.load %arg3[%c5, %c0_23] : memref<14x128xf32, #tpu.memory_space<vmem>>, vector<1x128xf32>
    %54 = vector.broadcast %53 : vector<1x128xf32> to vector<16x128xf32>
    %55 = arith.addf %52, %54 : vector<16x128xf32>
    %c2_24 = arith.constant 2 : index
    %c0_25 = arith.constant 0 : index
    %c0_26 = arith.constant 0 : index
    %56 = vector.load %arg2[%c2_24, %c0_25, %c0_26] : memref<6x128x128xbf16, #tpu.memory_space<vmem>>, vector<1x128x128xbf16>
    %57 = vector.shape_cast %56 : vector<1x128x128xbf16> to vector<128x128xbf16>
    %58 = arith.truncf %55 : vector<16x128xf32> to vector<16x128xbf16>
    %cst_27 = arith.constant dense<0.000000e+00> : vector<16x128xf32>
    %59 = tpu.matmul %58, %57, %cst_27 {dimension_numbers = #tpu.dot_dimension_numbers<[1], [0], [0], [1], [0, 0, 1, 1], [], []>} : vector<16x128xbf16>, vector<128x128xbf16>, vector<16x128xf32> -> vector<16x128xf32>
    %c6 = arith.constant 6 : index
    %c0_28 = arith.constant 0 : index
    %60 = vector.load %arg3[%c6, %c0_28] : memref<14x128xf32, #tpu.memory_space<vmem>>, vector<1x128xf32>
    %61 = vector.broadcast %60 : vector<1x128xf32> to vector<16x128xf32>
    %62 = arith.addf %59, %61 : vector<16x128xf32>
    %c7 = arith.constant 7 : index
    %c0_29 = arith.constant 0 : index
    %63 = vector.load %arg3[%c7, %c0_29] : memref<14x128xf32, #tpu.memory_space<vmem>>, vector<1x128xf32>
    %c8 = arith.constant 8 : index
    %c0_30 = arith.constant 0 : index
    %64 = vector.load %arg3[%c8, %c0_30] : memref<14x128xf32, #tpu.memory_space<vmem>>, vector<1x128xf32>
    %65 = vector.shape_cast %62 : vector<16x128xf32> to vector<2x8x128xf32>
    %cst_31 = arith.constant dense<0.000000e+00> : vector<2x128xf32>
    %66 = vector.multi_reduction <add>, %65, %cst_31 [1] : vector<2x8x128xf32> to vector<2x128xf32>
    %67 = vector.shape_cast %66 : vector<2x128xf32> to vector<2x1x128xf32>
    %cst_32 = arith.constant 8.000000e+00 : f32
    %68 = vector.broadcast %cst_32 : f32 to vector<2x1x128xf32>
    %69 = arith.divf %67, %68 : vector<2x1x128xf32>
    %70 = arith.mulf %65, %65 : vector<2x8x128xf32>
    %cst_33 = arith.constant dense<0.000000e+00> : vector<2x128xf32>
    %71 = vector.multi_reduction <add>, %70, %cst_33 [1] : vector<2x8x128xf32> to vector<2x128xf32>
    %72 = vector.shape_cast %71 : vector<2x128xf32> to vector<2x1x128xf32>
    %cst_34 = arith.constant 8.000000e+00 : f32
    %73 = vector.broadcast %cst_34 : f32 to vector<2x1x128xf32>
    %74 = arith.divf %72, %73 : vector<2x1x128xf32>
    %75 = arith.mulf %69, %69 : vector<2x1x128xf32>
    %76 = arith.subf %74, %75 : vector<2x1x128xf32>
    %77 = vector.broadcast %69 : vector<2x1x128xf32> to vector<2x8x128xf32>
    %78 = arith.subf %65, %77 : vector<2x8x128xf32>
    %cst_35 = arith.constant 9.99999974E-6 : f32
    %79 = vector.broadcast %cst_35 : f32 to vector<2x1x128xf32>
    %80 = arith.addf %76, %79 : vector<2x1x128xf32>
    %81 = math.rsqrt %80 : vector<2x1x128xf32>
    %82 = vector.broadcast %81 : vector<2x1x128xf32> to vector<2x8x128xf32>
    %83 = arith.mulf %78, %82 : vector<2x8x128xf32>
    %84 = vector.shape_cast %63 : vector<1x128xf32> to vector<1x1x128xf32>
    %85 = vector.broadcast %84 : vector<1x1x128xf32> to vector<2x8x128xf32>
    %86 = arith.mulf %83, %85 : vector<2x8x128xf32>
    %87 = vector.shape_cast %64 : vector<1x128xf32> to vector<1x1x128xf32>
    %88 = vector.broadcast %87 : vector<1x1x128xf32> to vector<2x8x128xf32>
    %89 = arith.addf %86, %88 : vector<2x8x128xf32>
    %90 = vector.shape_cast %89 : vector<2x8x128xf32> to vector<16x128xf32>
    %cst_36 = arith.constant 0.000000e+00 : f32
    %91 = vector.broadcast %cst_36 : f32 to vector<16x128xf32>
    %92 = arith.maximumf %90, %91 : vector<16x128xf32>
    %c3_37 = arith.constant 3 : index
    %c0_38 = arith.constant 0 : index
    %c0_39 = arith.constant 0 : index
    %93 = vector.load %arg2[%c3_37, %c0_38, %c0_39] : memref<6x128x128xbf16, #tpu.memory_space<vmem>>, vector<1x128x128xbf16>
    %94 = vector.shape_cast %93 : vector<1x128x128xbf16> to vector<128x128xbf16>
    %95 = arith.truncf %92 : vector<16x128xf32> to vector<16x128xbf16>
    %cst_40 = arith.constant dense<0.000000e+00> : vector<16x128xf32>
    %96 = tpu.matmul %95, %94, %cst_40 {dimension_numbers = #tpu.dot_dimension_numbers<[1], [0], [0], [1], [0, 0, 1, 1], [], []>} : vector<16x128xbf16>, vector<128x128xbf16>, vector<16x128xf32> -> vector<16x128xf32>
    %c9 = arith.constant 9 : index
    %c0_41 = arith.constant 0 : index
    %97 = vector.load %arg3[%c9, %c0_41] : memref<14x128xf32, #tpu.memory_space<vmem>>, vector<1x128xf32>
    %98 = vector.broadcast %97 : vector<1x128xf32> to vector<16x128xf32>
    %99 = arith.addf %96, %98 : vector<16x128xf32>
    %c4_42 = arith.constant 4 : index
    %c0_43 = arith.constant 0 : index
    %c0_44 = arith.constant 0 : index
    %100 = vector.load %arg2[%c4_42, %c0_43, %c0_44] : memref<6x128x128xbf16, #tpu.memory_space<vmem>>, vector<1x128x128xbf16>
    %101 = vector.shape_cast %100 : vector<1x128x128xbf16> to vector<128x128xbf16>
    %102 = arith.truncf %11 : vector<16x128xf32> to vector<16x128xbf16>
    %cst_45 = arith.constant dense<0.000000e+00> : vector<16x128xf32>
    %103 = tpu.matmul %102, %101, %cst_45 {dimension_numbers = #tpu.dot_dimension_numbers<[1], [0], [0], [1], [0, 0, 1, 1], [], []>} : vector<16x128xbf16>, vector<128x128xbf16>, vector<16x128xf32> -> vector<16x128xf32>
    %c10 = arith.constant 10 : index
    %c0_46 = arith.constant 0 : index
    %104 = vector.load %arg3[%c10, %c0_46] : memref<14x128xf32, #tpu.memory_space<vmem>>, vector<1x128xf32>
    %105 = vector.broadcast %104 : vector<1x128xf32> to vector<16x128xf32>
    %106 = arith.addf %103, %105 : vector<16x128xf32>
    %c11 = arith.constant 11 : index
    %c0_47 = arith.constant 0 : index
    %107 = vector.load %arg3[%c11, %c0_47] : memref<14x128xf32, #tpu.memory_space<vmem>>, vector<1x128xf32>
    %c12 = arith.constant 12 : index
    %c0_48 = arith.constant 0 : index
    %108 = vector.load %arg3[%c12, %c0_48] : memref<14x128xf32, #tpu.memory_space<vmem>>, vector<1x128xf32>
    %109 = vector.shape_cast %106 : vector<16x128xf32> to vector<2x8x128xf32>
    %cst_49 = arith.constant dense<0.000000e+00> : vector<2x128xf32>
    %110 = vector.multi_reduction <add>, %109, %cst_49 [1] : vector<2x8x128xf32> to vector<2x128xf32>
    %111 = vector.shape_cast %110 : vector<2x128xf32> to vector<2x1x128xf32>
    %cst_50 = arith.constant 8.000000e+00 : f32
    %112 = vector.broadcast %cst_50 : f32 to vector<2x1x128xf32>
    %113 = arith.divf %111, %112 : vector<2x1x128xf32>
    %114 = arith.mulf %109, %109 : vector<2x8x128xf32>
    %cst_51 = arith.constant dense<0.000000e+00> : vector<2x128xf32>
    %115 = vector.multi_reduction <add>, %114, %cst_51 [1] : vector<2x8x128xf32> to vector<2x128xf32>
    %116 = vector.shape_cast %115 : vector<2x128xf32> to vector<2x1x128xf32>
    %cst_52 = arith.constant 8.000000e+00 : f32
    %117 = vector.broadcast %cst_52 : f32 to vector<2x1x128xf32>
    %118 = arith.divf %116, %117 : vector<2x1x128xf32>
    %119 = arith.mulf %113, %113 : vector<2x1x128xf32>
    %120 = arith.subf %118, %119 : vector<2x1x128xf32>
    %121 = vector.broadcast %113 : vector<2x1x128xf32> to vector<2x8x128xf32>
    %122 = arith.subf %109, %121 : vector<2x8x128xf32>
    %cst_53 = arith.constant 9.99999974E-6 : f32
    %123 = vector.broadcast %cst_53 : f32 to vector<2x1x128xf32>
    %124 = arith.addf %120, %123 : vector<2x1x128xf32>
    %125 = math.rsqrt %124 : vector<2x1x128xf32>
    %126 = vector.broadcast %125 : vector<2x1x128xf32> to vector<2x8x128xf32>
    %127 = arith.mulf %122, %126 : vector<2x8x128xf32>
    %128 = vector.shape_cast %107 : vector<1x128xf32> to vector<1x1x128xf32>
    %129 = vector.broadcast %128 : vector<1x1x128xf32> to vector<2x8x128xf32>
    %130 = arith.mulf %127, %129 : vector<2x8x128xf32>
    %131 = vector.shape_cast %108 : vector<1x128xf32> to vector<1x1x128xf32>
    %132 = vector.broadcast %131 : vector<1x1x128xf32> to vector<2x8x128xf32>
    %133 = arith.addf %130, %132 : vector<2x8x128xf32>
    %134 = vector.shape_cast %133 : vector<2x8x128xf32> to vector<16x128xf32>
    %cst_54 = arith.constant 0.000000e+00 : f32
    %135 = vector.broadcast %cst_54 : f32 to vector<16x128xf32>
    %136 = arith.maximumf %134, %135 : vector<16x128xf32>
    %c5_55 = arith.constant 5 : index
    %c0_56 = arith.constant 0 : index
    %c0_57 = arith.constant 0 : index
    %137 = vector.load %arg2[%c5_55, %c0_56, %c0_57] : memref<6x128x128xbf16, #tpu.memory_space<vmem>>, vector<1x128x128xbf16>
    %138 = vector.shape_cast %137 : vector<1x128x128xbf16> to vector<128x128xbf16>
    %139 = arith.truncf %136 : vector<16x128xf32> to vector<16x128xbf16>
    %cst_58 = arith.constant dense<0.000000e+00> : vector<16x128xf32>
    %140 = tpu.matmul %139, %138, %cst_58 {dimension_numbers = #tpu.dot_dimension_numbers<[1], [0], [0], [1], [0, 0, 1, 1], [], []>} : vector<16x128xbf16>, vector<128x128xbf16>, vector<16x128xf32> -> vector<16x128xf32>
    %c13 = arith.constant 13 : index
    %c0_59 = arith.constant 0 : index
    %141 = vector.load %arg3[%c13, %c0_59] : memref<14x128xf32, #tpu.memory_space<vmem>>, vector<1x128xf32>
    %142 = vector.broadcast %141 : vector<1x128xf32> to vector<16x128xf32>
    %143 = arith.addf %140, %142 : vector<16x128xf32>
    %144 = arith.mulf %99, %99 : vector<16x128xf32>
    %cst_60 = arith.constant dense<0.000000e+00> : vector<16xf32>
    %145 = vector.multi_reduction <add>, %144, %cst_60 [1] : vector<16x128xf32> to vector<16xf32>
    %146 = vector.shape_cast %145 : vector<16xf32> to vector<16x1xf32>
    %cst_61 = arith.constant 1.000000e-24 : f32
    %147 = vector.broadcast %cst_61 : f32 to vector<16x1xf32>
    %148 = arith.maximumf %146, %147 : vector<16x1xf32>
    %149 = math.rsqrt %148 : vector<16x1xf32>
    %150 = vector.broadcast %149 : vector<16x1xf32> to vector<16x128xf32>
    %151 = arith.mulf %99, %150 : vector<16x128xf32>
    %152 = arith.mulf %143, %143 : vector<16x128xf32>
    %cst_62 = arith.constant dense<0.000000e+00> : vector<16xf32>
    %153 = vector.multi_reduction <add>, %152, %cst_62 [1] : vector<16x128xf32> to vector<16xf32>
    %154 = vector.shape_cast %153 : vector<16xf32> to vector<16x1xf32>
    %cst_63 = arith.constant 1.000000e-24 : f32
    %155 = vector.broadcast %cst_63 : f32 to vector<16x1xf32>
    %156 = arith.maximumf %154, %155 : vector<16x1xf32>
    %157 = math.rsqrt %156 : vector<16x1xf32>
    %158 = vector.broadcast %157 : vector<16x1xf32> to vector<16x128xf32>
    %159 = arith.mulf %143, %158 : vector<16x128xf32>
    %160 = vector.extract_strided_slice %151 {offsets = [0, 0], sizes = [8, 128], strides = [1, 1]} : vector<16x128xf32> to vector<8x128xf32>
    %161 = vector.extract_strided_slice %151 {offsets = [8, 0], sizes = [8, 128], strides = [1, 1]} : vector<16x128xf32> to vector<8x128xf32>
    %162 = vector.extract_strided_slice %159 {offsets = [0, 0], sizes = [8, 128], strides = [1, 1]} : vector<16x128xf32> to vector<8x128xf32>
    %163 = vector.extract_strided_slice %159 {offsets = [8, 0], sizes = [8, 128], strides = [1, 1]} : vector<16x128xf32> to vector<8x128xf32>
    %164 = arith.mulf %160, %163 : vector<8x128xf32>
    %cst_64 = arith.constant dense<0.000000e+00> : vector<8xf32>
    %165 = vector.multi_reduction <add>, %164, %cst_64 [1] : vector<8x128xf32> to vector<8xf32>
    %166 = vector.shape_cast %165 : vector<8xf32> to vector<8x1xf32>
    %cst_65 = arith.constant 2.000000e+00 : f32
    %167 = vector.broadcast %cst_65 : f32 to vector<8x1xf32>
    %168 = arith.mulf %167, %166 : vector<8x1xf32>
    %cst_66 = arith.constant 2.000000e+00 : f32
    %169 = vector.broadcast %cst_66 : f32 to vector<8x1xf32>
    %170 = arith.subf %169, %168 : vector<8x1xf32>
    %171 = arith.mulf %161, %162 : vector<8x128xf32>
    %cst_67 = arith.constant dense<0.000000e+00> : vector<8xf32>
    %172 = vector.multi_reduction <add>, %171, %cst_67 [1] : vector<8x128xf32> to vector<8xf32>
    %173 = vector.shape_cast %172 : vector<8xf32> to vector<8x1xf32>
    %cst_68 = arith.constant 2.000000e+00 : f32
    %174 = vector.broadcast %cst_68 : f32 to vector<8x1xf32>
    %175 = arith.mulf %174, %173 : vector<8x1xf32>
    %cst_69 = arith.constant 2.000000e+00 : f32
    %176 = vector.broadcast %cst_69 : f32 to vector<8x1xf32>
    %177 = arith.subf %176, %175 : vector<8x1xf32>
    %178 = arith.addf %170, %177 : vector<8x1xf32>
    %c0_70 = arith.constant 0 : index
    %c0_71 = arith.constant 0 : index
    %179 = vector.load %arg4[%c0_70, %c0_71] : memref<8x1xf32, #tpu.memory_space<vmem>>, vector<8x1xf32>
    tpu.vector_store %arg4[%c0_70, %c0_71], %178 {strides = array<i32>} : memref<8x1xf32, #tpu.memory_space<vmem>>, vector<8x1xf32>,
    return
  }
}

</mosaic_0001>

<bundles_post_ra>
// kernel: tpu_custom_call.1
= control target key start
LH: loop header
LB: loop body
LE: loop exit
PB: predicated region body
PF: predicated region fallthrough
CT: control target
= control target key end

     0   :  { %9 = vsyncpa [#allocation3], 0  ;;  %s1704_s0 = inlined_call_operand.hbm [shape: f32[16,128], index: 0, kind: input, shape index: {}]   ;;  %s1705_s1 = inlined_call_operand.hbm [shape: bf16[128,256], index: 1, kind: input, shape index: {}]   ;;  %s1706_s2 = inlined_call_operand.hbm [shape: bf16[6,128,128], index: 2, kind: input, shape index: {}]   ;;  %s1707_s3 = inlined_call_operand.hbm [shape: f32[14,128], index: 3, kind: input, shape index: {}]   ;;  %s1708_s4 = inlined_call_operand.vmem [shape: f32[8,1], index: 4, kind: output, shape index: {}]  }
   0x1   :  { %10 = vsyncpa [#allocation5], 0 }
   0x2   :  { %11 = vsyncpa [#allocation8], 0  ;;  %s1560_s15 = smov [#allocation4]   ;;  %s1561_s17 = smov [#allocation2]  }
   0x3   :  { %s29_s16 = sshll.u32 %s1560_s15, 4  ;;  %s17_s18 = sshll.u32 %s1561_s17, 4  ;;  %s30_s16 = int_to_ptr.vmem [resolvable:$true] %s29_s16  ;;  %s18_s18 = int_to_ptr.vmem [resolvable:$true] %s17_s18 }
   0x4   :  { %s1482_s19 = scalar_lea.vmem %s30_s16, 2048  ;;  %p1487_p1 = scmp.lt.s32.totalorder %s30_s16, %s30_s16 }
   0x5   :  { %p1483_p0 = scmp.ne.s32.totalorder %s30_s16, %s1482_s19  ;;  %p1488_p2 = scmp.lt.s32.totalorder %s1482_s19, %s1482_s19 }
   0x7   :  { %p1489_p3 = por %p1488_p2, %p1487_p1 }
   0x9   :  { %p1490_p4 = pnand %p1489_p3, %p1483_p0 }
   0xb   :  { %1493 = shalt.err (!%p1490_p4)
}
   0xc   :  { %s1562_s20 = smov 128   ;;  %s1563_s21 = smov 8  }
   0xd   :  { %35 = dma.hbm_to_vmem [thread:$0]  %s1705_s1, 2048, %s30_s16, [#allocation5], %s1562_s20, %s1562_s20, %s1563_s21  }
   0xe   :  { %s1502_s24 = scalar_lea.vmem %s18_s18, 256  ;;  %p1507_p6 = scmp.lt.s32.totalorder %s18_s18, %s18_s18 }
   0xf   :  { %p1503_p5 = scmp.ne.s32.totalorder %s18_s18, %s1502_s24  ;;  %p1508_p7 = scmp.lt.s32.totalorder %s1502_s24, %s1502_s24 }
  0x11   :  { %p1509_p8 = por %p1508_p7, %p1507_p6 }
  0x13   :  { %p1510_p9 = pnand %p1509_p8, %p1503_p5 }
  0x15   :  { %1513 = shalt.err (!%p1510_p9)
}
  0x16   :  { %23 = dma.hbm_to_vmem [thread:$0]  %s1704_s0, 256, %s18_s18, [#allocation3], %s1562_s20, %s1562_s20, %s1563_s21  }
  0x17   :  { %s1564_s27 = smov [#allocation6]  }
  0x18   :  { %s41_s28 = sshll.u32 %s1564_s27, 4  ;;  %s42_s28 = int_to_ptr.vmem [resolvable:$true] %s41_s28 }
  0x19   :  { %s1522_s29 = scalar_lea.vmem %s42_s28, 6144  ;;  %p1527_p11 = scmp.lt.s32.totalorder %s42_s28, %s42_s28 }
  0x1a   :  { %p1523_p10 = scmp.ne.s32.totalorder %s42_s28, %s1522_s29  ;;  %p1528_p12 = scmp.lt.s32.totalorder %s1522_s29, %s1522_s29 }
  0x1c   :  { %p1529_p13 = por %p1528_p12, %p1527_p11 }
  0x1e   :  { %p1530_p0 = pnand %p1529_p13, %p1523_p10 }
  0x20   :  { %1533 = shalt.err (!%p1530_p0)
}
  0x21   :  { %s1565_s1 = smov 64   ;;  %s1566_s30 = smov 4  }
  0x22   :  { %47 = dma.hbm_to_vmem [thread:$0]  %s1706_s2, 6144, %s42_s28, [#allocation5], %s1565_s1, %s1565_s1, %s1566_s30  }
  0x23   :  { %s1567_s7 = smov [#allocation7]  }
  0x24   :  { %s53_s8 = sshll.u32 %s1567_s7, 4  ;;  %s54_s8 = int_to_ptr.vmem [resolvable:$true] %s53_s8 }
  0x25   :  { %s1542_s0 = scalar_lea.vmem %s54_s8, 256  ;;  %p1547_p2 = scmp.lt.s32.totalorder %s54_s8, %s54_s8 }
  0x26   :  { %p1543_p1 = scmp.ne.s32.totalorder %s54_s8, %s1542_s0  ;;  %p1548_p3 = scmp.lt.s32.totalorder %s1542_s0, %s1542_s0 }
  0x28   :  { %p1549_p4 = por %p1548_p3, %p1547_p2 }
  0x2a   :  { %p1550_p5 = pnand %p1549_p4, %p1543_p1 }
  0x2c   :  { %1553 = shalt.err (!%p1550_p5)
}
  0x2d   :  { %59 = dma.hbm_to_vmem [thread:$0]  %s1707_s3, 256, %s54_s8, [#allocation8], %s1562_s20, %s1562_s20, %s1563_s21  }
  0x2e   :  { %1554 = dma.done.wait [#allocation3], 256  }
  0x2f   :  { %1555 = vsyncadd [#allocation3], 4294967040 }
  0x30   :  { %1556 = dma.done.wait [#allocation5], 8192  }
  0x31   :  { %1557 = vsyncadd [#allocation5], 4294959104 }
  0x32   :  { %1558 = dma.done.wait [#allocation8], 256  }
  0x33   :  { %1559 = vsyncadd [#allocation8], 4294967040  ;;  %v1568_v0 = vmov 0   ;;  %v1569_v1 = vmov 0.0   ;;  %v1382_v2 = vld [vmem:[#allocation4 + $0x74] ss:$8 sps:$4 sm:$0xff]  }
  0x34   :  { %204 = vmatprep.mubr.bf16.mxu0 %v1568_v0  ;;  %1251 = vmatprep.subr.bf16.mxu1 %v1569_v1  ;;  %v1384_v3 = vld [vmem:[#allocation4 + $0x70] ss:$8 sps:$4 sm:$0xff]   ;;  %v1385_v4 = vld [vmem:[#allocation4 + $0x64] ss:$8 sps:$4 sm:$0xff]   ;;  %v1387_v5 = vld [vmem:[#allocation4 + $0x60] ss:$8 sps:$4 sm:$0xff]  }
  0x35   :  { %172 = vmatprep.subr.bf16.mxu0 %v1382_v2  ;;  %v1388_v6 = vld [vmem:[#allocation4 + $0x54] ss:$8 sps:$4 sm:$0xff]   ;;  %v1390_v7 = vld [vmem:[#allocation4 + $0x50] ss:$8 sps:$4 sm:$0xff]   ;;  %v1391_v8 = vld [vmem:[#allocation4 + $0x44] ss:$8 sps:$4 sm:$0xff]  }
  0x36   :  { %173 = vmatpush1.bf16.msra.mxu0 %v1384_v3  ;;  %v1393_v9 = vld [vmem:[#allocation4 + $0x40] ss:$8 sps:$4 sm:$0xff]   ;;  %v1394_v10 = vld [vmem:[#allocation4 + $0x34] ss:$8 sps:$4 sm:$0xff]   ;;  %v1396_v13 = vld [vmem:[#allocation4 + $0x30] ss:$8 sps:$4 sm:$0xff]  }
  0x37   :  { %174 = vmatprep.subr.bf16.mxu0 %v1385_v4  ;;  %v1406_v11 = vld [vmem:[#allocation6 + $0x38] sm:$0xff]   ;;  %v1407_v12 = vld [vmem:[#allocation6 + $0x30] sm:$0xff]   ;;  %v1397_v14 = vld [vmem:[#allocation4 + $0x24] ss:$8 sps:$4 sm:$0xff]   ;;  %vm1570_vm0 = vmmov 0   ;;  %vm1110_vm1 = vcmask 7168  }
  0x38   :  { %1252 = vmatpush3.bf16.msra.mxu1 %v1406_v11  ;;  %v1399_v15 = vld [vmem:[#allocation4 + $0x20] ss:$8 sps:$4 sm:$0xff]   ;;  %v1400_v17 = vld [vmem:[#allocation4 + $0x14] ss:$8 sps:$4 sm:$0xff]   ;;  %v1402_v19 = vld [vmem:[#allocation4 + $0x10] ss:$8 sps:$4 sm:$0xff]   ;;  %1267 = vmatprep.mubr.msk.bf16.mxu1 %vm1570_vm0, %v1569_v1 }
  0x39   :  { %1253 = vmatprep.subr.bf16.mxu1 %v1569_v1  ;;  %v1408_v16 = vld [vmem:[#allocation6 + $0x28] sm:$0xff]   ;;  %v1409_v18 = vld [vmem:[#allocation6 + $0x20] sm:$0xff]   ;;  %v1410_v21 = vld [vmem:[#allocation6 + $0x18] sm:$0xff]  }
  0x3a   :  { %175 = vmatpush1.bf16.msra.mxu0 %v1387_v5  ;;  %v1403_v20 = vld [vmem:[#allocation4 + $0x4] ss:$8 sps:$4 sm:$0xff]   ;;  %v1405_v22 = vld [vmem:[#allocation4] ss:$8 sps:$4 sm:$0xff]   ;;  %v73_v23 = vld [vmem:[#allocation2] sm:$0xff] }
  0x3b   :  { %176 = vmatprep.subr.bf16.mxu0 %v1388_v6  ;;  %v74_v24 = vld [vmem:[#allocation2 + $0x8] sm:$0xff]  ;;  %v1411_v25 = vld [vmem:[#allocation6 + $0x10] sm:$0xff]   ;;  %v1412_v27 = vld [vmem:[#allocation6 + $0x8] sm:$0xff]  }
  0x3c   :  { %1254 = vmatpush3.bf16.msra.mxu1 %v1407_v12  ;;  %v91_v26 = vpack.c.bf16 %v74_v24, %v73_v23  ;;  %v1413_v28 = vld [vmem:[#allocation6] sm:$0xff]   ;;  %v1414_v36 = vld [vmem:[#allocation6 + $0x78] sm:$0xff]   ;;  %v1415_v37 = vld [vmem:[#allocation6 + $0x70] sm:$0xff]  }
  0x3d   :  { %1255 = vmatprep.subr.bf16.mxu1 %v1569_v1  ;;  %v1135_v30 = vld [vmem:[#allocation7] ss:$0 sm:$0xff]  ;;  %v1416_v38 = vld [vmem:[#allocation6 + $0x68] sm:$0xff]   ;;  %v1418_v40 = vld [vmem:[#allocation6 + $0x58] sm:$0xff]  }
  0x3e   :  { %177 = vmatpush1.bf16.msra.mxu0 %v1390_v7  ;;  %v1417_v39 = vld [vmem:[#allocation6 + $0x60] sm:$0xff]   ;;  %v1419_v41 = vld [vmem:[#allocation6 + $0x50] sm:$0xff]   ;;  %v1420_v42 = vld [vmem:[#allocation6 + $0x48] sm:$0xff]  }
  0x3f   :  { %178 = vmatprep.subr.bf16.mxu0 %v1391_v8  ;;  %v1421_v43 = vld [vmem:[#allocation6 + $0x40] sm:$0xff]   ;;  %v1422_v44 = vld [vmem:[#allocation6 + $0xb8] sm:$0xff]   ;;  %v1423_v45 = vld [vmem:[#allocation6 + $0xb0] sm:$0xff]  }
  0x40   :  { %1256 = vmatpush3.bf16.msra.mxu1 %v1408_v16  ;;  %v1424_v46 = vld [vmem:[#allocation6 + $0xa8] sm:$0xff]   ;;  %v1425_v47 = vld [vmem:[#allocation6 + $0xa0] sm:$0xff]   ;;  %v1426_v48 = vld [vmem:[#allocation6 + $0x98] sm:$0xff]  }
  0x41   :  { %1257 = vmatprep.subr.bf16.mxu1 %v1569_v1  ;;  %v1427_v49 = vld [vmem:[#allocation6 + $0x90] sm:$0xff]   ;;  %v1137_v50 = vld [vmem:[#allocation7 + $0x2] ss:$0 sm:$0xff] }
  0x42   :  { %179 = vmatpush1.bf16.msra.mxu0 %v1393_v9 }
  0x43   :  { %180 = vmatprep.subr.bf16.mxu0 %v1394_v10 }
  0x44   :  { %1258 = vmatpush3.bf16.msra.mxu1 %v1409_v18 }
  0x45   :  { %1259 = vmatprep.subr.bf16.mxu1 %v1569_v1 }
  0x46   :  { %181 = vmatpush1.bf16.msra.mxu0 %v1396_v13 }
  0x47   :  { %182 = vmatprep.subr.bf16.mxu0 %v1397_v14 }
  0x48   :  { %1260 = vmatpush3.bf16.msra.mxu1 %v1410_v21 }
  0x49   :  { %1261 = vmatprep.subr.bf16.mxu1 %v1569_v1 }
  0x4a   :  { %183 = vmatpush1.bf16.msra.mxu0 %v1399_v15 }
  0x4b   :  { %184 = vmatprep.subr.bf16.mxu0 %v1400_v17 }
  0x4c   :  { %1262 = vmatpush3.bf16.msra.mxu1 %v1411_v25 }
  0x4d   :  { %1263 = vmatprep.subr.bf16.mxu1 %v1569_v1 }
  0x4e   :  { %185 = vmatpush1.bf16.msra.mxu0 %v1402_v19 }
  0x4f   :  { %186 = vmatprep.subr.bf16.mxu0 %v1403_v20 }
  0x50   :  { %1264 = vmatpush3.bf16.msra.mxu1 %v1412_v27 }
  0x51   :  { %1265 = vmatprep.subr.bf16.mxu1 %v1569_v1 }
  0x52   :  { %187 = vmatpush1.bf16.msra.mxu0 %v1405_v22 }
  0x53   :  { %1271 = vmatprep.subr.bf16.mxu0 %v1569_v1 }
  0x54   :  { %1266 = vmatpush3.bf16.msra.mxu1 %v1413_v28 }
  0x55   :  { %205 = vmatmul.mubr.bf16.vlgmr.msra.gmra.mxu0 %v91_v26  ;;  %1291 = vmatprep.subr.bf16.mxu1 %v1569_v1 }
  0x56   :  { %1287 = vmatprep.mubr.msk.bf16.mxu0 %vm1570_vm0, %v1569_v1  ;;  %1272 = vmatpush3.bf16.msra.mxu0 %v1414_v36 }
  0x57   :  { %1273 = vmatprep.subr.bf16.mxu0 %v1569_v1 }
  0x5a   :  { %1274 = vmatpush3.bf16.msra.mxu0 %v1415_v37 }
  0x5b   :  { %1275 = vmatprep.subr.bf16.mxu0 %v1569_v1 }
  0x5e   :  { %1276 = vmatpush3.bf16.msra.mxu0 %v1416_v38  ;;  %v1147_v38 = vld [vmem:[#allocation7 + $0x4] ss:$0 sm:$0xff] }
  0x5f   :  { %1277 = vmatprep.subr.bf16.mxu0 %v1569_v1 }
  0x62   :  { %1278 = vmatpush3.bf16.msra.mxu0 %v1417_v39 }
  0x63   :  { %1279 = vmatprep.subr.bf16.mxu0 %v1569_v1 }
  0x66   :  { %1280 = vmatpush3.bf16.msra.mxu0 %v1418_v40 }
  0x67   :  { %1281 = vmatprep.subr.bf16.mxu0 %v1569_v1 }
  0x6a   :  { %1282 = vmatpush3.bf16.msra.mxu0 %v1419_v41 }
  0x6b   :  { %1283 = vmatprep.subr.bf16.mxu0 %v1569_v1 }
  0x6e   :  { %1284 = vmatpush3.bf16.msra.mxu0 %v1420_v42 }
  0x6f   :  { %1285 = vmatprep.subr.bf16.mxu0 %v1569_v1 }
  0x72   :  { %1286 = vmatpush3.bf16.msra.mxu0 %v1421_v43 }
  0x73   :  { %1311 = vmatprep.subr.bf16.mxu0 %v1569_v1 }
 0x115   :  { %v206_v29 = vpop.f32.mrf.mxu0 }
 0x116   :  { %v220_v33 = vadd.f32 %v1135_v30, %v206_v29 }
 0x117   :  { %v1631_v31 = vpop.f32.mrf.mxu0 }
 0x119   :  { %v210_v32 = vpop.f32.mrf.mxu0 }
 0x11a   :  { %v221_v34 = vadd.f32 %v1135_v30, %v210_v32 }
 0x11c   :  { %v245_v35 = vpack.c.bf16 %v221_v34, %v220_v33  ;;  %v1146_v34 = vld [vmem:[#allocation7 + $0x3] ss:$0 sm:$0xff] }
 0x11e   :  { %1268 = vmatmul.mubr.bf16.vlgmr.msra.gmra.mxu1 %v245_v35 }
 0x11f   :  { %1307 = vmatprep.mubr.msk.bf16.mxu1 %vm1570_vm0, %v1569_v1  ;;  %1292 = vmatpush3.bf16.msra.mxu1 %v1422_v44 }
 0x120   :  { %1293 = vmatprep.subr.bf16.mxu1 %v1569_v1 }
 0x123   :  { %1294 = vmatpush3.bf16.msra.mxu1 %v1423_v45 }
 0x124   :  { %1295 = vmatprep.subr.bf16.mxu1 %v1569_v1 }
 0x127   :  { %1296 = vmatpush3.bf16.msra.mxu1 %v1424_v46  ;;  %v1428_v46 = vld [vmem:[#allocation6 + $0x88] sm:$0xff]  }
 0x128   :  { %1297 = vmatprep.subr.bf16.mxu1 %v1569_v1 }
 0x12b   :  { %1298 = vmatpush3.bf16.msra.mxu1 %v1425_v47  ;;  %v1429_v47 = vld [vmem:[#allocation6 + $0x80] sm:$0xff]  }
 0x12c   :  { %1299 = vmatprep.subr.bf16.mxu1 %v1569_v1 }
 0x12f   :  { %1300 = vmatpush3.bf16.msra.mxu1 %v1426_v48  ;;  %v212_v48 = vpop.f32.mrf.mxu0 }
 0x130   :  { %1301 = vmatprep.subr.bf16.mxu1 %v1569_v1 }
 0x133   :  { %1302 = vmatpush3.bf16.msra.mxu1 %v1427_v49 }
 0x134   :  { %1303 = vmatprep.subr.bf16.mxu1 %v1569_v1 }
 0x137   :  { %1304 = vmatpush3.bf16.msra.mxu1 %v1428_v46 }
 0x138   :  { %1305 = vmatprep.subr.bf16.mxu1 %v1569_v1 }
 0x13b   :  { %1306 = vmatpush3.bf16.msra.mxu1 %v1429_v47 }
 0x13c   :  { %1331 = vmatprep.subr.bf16.mxu1 %v1569_v1 }
 0x1de   :  { %v333_v51 = vpop.f32.mrf.mxu1 }
 0x1df   :  { %v334_v52 = vadd.f32 %v1137_v50, %v333_v51 }
 0x1e0   :  { %v1269_v53 = vpop.f32.mrf.mxu1 }
 0x1e1   :  { %v342_v54 = vrot.slane %v334_v52, 4  ;;  %v357_v55 = vmul.f32 %v334_v52, %v334_v52 }
 0x1e2   :  { %v336_v56 = vpop.f32.mrf.mxu1 }
 0x1e3   :  { %v343_v57 = vadd.f32 %v342_v54, %v334_v52  ;;  %v359_v58 = vrot.slane %v357_v55, 4  ;;  %v337_v59 = vadd.f32 %v1137_v50, %v336_v56  ;;  %v1148_v50 = vld [vmem:[#allocation7 + $0x5] ss:$0 sm:$0xff]  ;;  %v1430_v56 = vld [vmem:[#allocation6 + $0x138] sm:$0xff]  }
 0x1e4   :  { %v1270_v60 = vpop.f32.mrf.mxu1 }
 0x1e5   :  { %v344_v61 = vrot.slane %v343_v57, 2  ;;  %v360_v62 = vadd.f32 %v359_v58, %v357_v55  ;;  %v348_v63 = vrot.slane %v337_v59, 4  ;;  %v358_v0 = vmul.f32 %v337_v59, %v337_v59  ;;  %v1431_v58 = vld [vmem:[#allocation6 + $0x130] sm:$0xff]   ;;  %v1433_v60 = vld [vmem:[#allocation6 + $0x120] sm:$0xff]  }
 0x1e7   :  { %v345_v2 = vadd.f32 %v344_v61, %v343_v57  ;;  %v361_v3 = vrot.slane %v360_v62, 2  ;;  %v349_v4 = vadd.f32 %v348_v63, %v337_v59  ;;  %v365_v5 = vrot.slane %v358_v0, 4  ;;  %v1434_v61 = vld [vmem:[#allocation6 + $0x118] sm:$0xff]   ;;  %v1436_v63 = vld [vmem:[#allocation6 + $0x108] sm:$0xff]  }
 0x1e9   :  { %v346_v6 = vrot.slane %v345_v2, 1  ;;  %v362_v7 = vadd.f32 %v361_v3, %v360_v62  ;;  %v350_v8 = vrot.slane %v349_v4, 2  ;;  %v366_v9 = vadd.f32 %v365_v5, %v358_v0  ;;  %v1435_v62 = vld [vmem:[#allocation6 + $0x110] sm:$0xff]   ;;  %v1136_v0 = vld [vmem:[#allocation7 + $0x1] ss:$0 sm:$0xff] }
 0x1ea   :  { %v228_v3 = vadd.f32 %v1136_v0, %v212_v48 }
 0x1eb   :  { %v347_v10 = vadd.f32 %v346_v6, %v345_v2  ;;  %v363_v11 = vrot.slane %v362_v7, 1  ;;  %v351_v12 = vadd.f32 %v350_v8, %v349_v4  ;;  %v367_v13 = vrot.slane %v366_v9, 2  ;;  %v1437_v2 = vld [vmem:[#allocation6 + $0x100] sm:$0xff]   ;;  %v1438_v6 = vld [vmem:[#allocation6 + $0xf8] sm:$0xff]   ;;  %v1440_v8 = vld [vmem:[#allocation6 + $0xe8] sm:$0xff]  }
 0x1ec   :  { %v227_v4 = vadd.f32 %v1136_v0, %v1631_v31  ;;  %v1442_v31 = vld [vmem:[#allocation6 + $0xd8] sm:$0xff]  }
 0x1ed   :  { %v355_v14 = vmul.f32 0.125, %v347_v10  ;;  %v364_v15 = vadd.f32 %v363_v11, %v362_v7  ;;  %v352_v16 = vrot.slane %v351_v12, 1  ;;  %v368_v17 = vadd.f32 %v367_v13, %v366_v9  ;;  %v1439_v7 = vld [vmem:[#allocation6 + $0xf0] sm:$0xff]   ;;  %v1441_v9 = vld [vmem:[#allocation6 + $0xe0] sm:$0xff]   ;;  %v1444_v11 = vld [vmem:[#allocation6 + $0xc8] sm:$0xff]  }
 0x1ee   :  { %v810_v5 = vpack.c.bf16 %v228_v3, %v227_v4  ;;  %v1443_v10 = vld [vmem:[#allocation6 + $0xd0] sm:$0xff]   ;;  %v1157_v13 = vld [vmem:[#allocation7 + $0x6] ss:$0 sm:$0xff] }
 0x1ef   :  { %v371_v18 = vmul.f32 0.125, %v364_v15  ;;  %v373_v19 = vmul.f32 %v355_v14, %v355_v14  ;;  %v353_v20 = vadd.f32 %v352_v16, %v351_v12  ;;  %v369_v21 = vrot.slane %v368_v17, 1  ;;  %v1445_v12 = vld [vmem:[#allocation6 + $0xc0] sm:$0xff]  }
 0x1f0   :  { %v377_v30 = vsub.f32 %v334_v52, %v355_v14 }
 0x1f1   :  { %v375_v22 = vsub.f32 %v371_v18, %v373_v19  ;;  %v356_v23 = vmul.f32 0.125, %v353_v20  ;;  %v370_v24 = vadd.f32 %v369_v21, %v368_v17 }
 0x1f3   :  { %v379_v25 = vadd.f32 1e-05, %v375_v22  ;;  %v374_v26 = vmul.f32 %v356_v23, %v356_v23  ;;  %v372_v27 = vmul.f32 0.125, %v370_v24  ;;  %v378_v35 = vsub.f32 %v337_v59, %v356_v23  ;;  %v1432_v59 = vld [vmem:[#allocation6 + $0x128] sm:$0xff]  }
 0x1f5   :  { %1454 = vrsqrt.f32 %v379_v25  ;;  %v376_v28 = vsub.f32 %v372_v27, %v374_v26 }
 0x1f7   :  { %v380_v29 = vadd.f32 1e-05, %v376_v28 }
 0x1f9   :  { %1456 = vrsqrt.f32 %v380_v29 }
 0x202   :  { %v1455_v32 = vpop.eup %1454 }
 0x203   :  { %v383_v33 = vmul.f32 %v1455_v32, %v377_v30 }
 0x205   :  { %v389_v36 = vmul.f32 %v1146_v34, %v383_v33 }
 0x206   :  { %v1457_v37 = vpop.eup %1456 }
 0x207   :  { %v384_v39 = vmul.f32 %v1457_v37, %v378_v35  ;;  %v395_v41 = vadd.f32 %v1147_v38, %v389_v36 }
 0x209   :  { %v390_v40 = vmul.f32 %v1146_v34, %v384_v39  ;;  %v397_v43 = vmax.f32 %v395_v41, 0.0 }
 0x20b   :  { %v396_v42 = vadd.f32 %v1147_v38, %v390_v40 }
 0x20d   :  { %v398_v44 = vmax.f32 %v396_v42, 0.0 }
 0x20f   :  { %v416_v45 = vpack.c.bf16 %v398_v44, %v397_v43 }
 0x211   :  { %1288 = vmatmul.mubr.bf16.vlgmr.msra.gmra.mxu0 %v416_v45 }
 0x212   :  { %1327 = vmatprep.mubr.msk.bf16.mxu0 %vm1570_vm0, %v1569_v1  ;;  %1312 = vmatpush3.bf16.msra.mxu0 %v1438_v6 }
 0x213   :  { %1313 = vmatprep.subr.bf16.mxu0 %v1569_v1 }
 0x216   :  { %1314 = vmatpush3.bf16.msra.mxu0 %v1439_v7  ;;  %v1166_v7 = vld [vmem:[#allocation7 + $0x7] ss:$0 sm:$0xff] }
 0x217   :  { %1315 = vmatprep.subr.bf16.mxu0 %v1569_v1 }
 0x21a   :  { %1316 = vmatpush3.bf16.msra.mxu0 %v1440_v8 }
 0x21b   :  { %1317 = vmatprep.subr.bf16.mxu0 %v1569_v1 }
 0x21e   :  { %1318 = vmatpush3.bf16.msra.mxu0 %v1441_v9 }
 0x21f   :  { %1319 = vmatprep.subr.bf16.mxu0 %v1569_v1 }
 0x222   :  { %1320 = vmatpush3.bf16.msra.mxu0 %v1442_v31 }
 0x223   :  { %1321 = vmatprep.subr.bf16.mxu0 %v1569_v1 }
 0x226   :  { %1322 = vmatpush3.bf16.msra.mxu0 %v1443_v10 }
 0x227   :  { %1323 = vmatprep.subr.bf16.mxu0 %v1569_v1 }
 0x22a   :  { %1324 = vmatpush3.bf16.msra.mxu0 %v1444_v11 }
 0x22b   :  { %1325 = vmatprep.subr.bf16.mxu0 %v1569_v1 }
 0x22e   :  { %1326 = vmatpush3.bf16.msra.mxu0 %v1445_v12 }
 0x22f   :  { %1351 = vmatprep.subr.bf16.mxu0 %v1569_v1 }
 0x2d1   :  { %v504_v49 = vpop.f32.mrf.mxu0 }
 0x2d2   :  { %v505_v53 = vadd.f32 %v1148_v50, %v504_v49 }
 0x2d3   :  { %v1289_v51 = vpop.f32.mrf.mxu0 }
 0x2d5   :  { %v507_v52 = vpop.f32.mrf.mxu0 }
 0x2d6   :  { %v508_v54 = vadd.f32 %v1148_v50, %v507_v52 }
 0x2d7   :  { %v1290_v55 = vpop.f32.mrf.mxu0 }
 0x2d8   :  { %v528_v57 = vpack.c.bf16 %v508_v54, %v505_v53 }
 0x2da   :  { %1308 = vmatmul.mubr.bf16.vlgmr.msra.gmra.mxu1 %v528_v57  ;;  %v1177_v57 = vld [vmem:[#allocation7 + $0xa] ss:$0 sm:$0xff] }
 0x2db   :  { %1332 = vmatpush3.bf16.msra.mxu1 %v1430_v56  ;;  %1347 = vmatprep.mubr.msk.bf16.mxu1 %vm1570_vm0, %v1569_v1 }
 0x2dc   :  { %1333 = vmatprep.subr.bf16.mxu1 %v1569_v1 }
 0x2df   :  { %1334 = vmatpush3.bf16.msra.mxu1 %v1431_v58 }
 0x2e0   :  { %1335 = vmatprep.subr.bf16.mxu1 %v1569_v1 }
 0x2e3   :  { %1336 = vmatpush3.bf16.msra.mxu1 %v1432_v59 }
 0x2e4   :  { %1337 = vmatprep.subr.bf16.mxu1 %v1569_v1 }
 0x2e7   :  { %1338 = vmatpush3.bf16.msra.mxu1 %v1433_v60 }
 0x2e8   :  { %1339 = vmatprep.subr.bf16.mxu1 %v1569_v1 }
 0x2eb   :  { %1340 = vmatpush3.bf16.msra.mxu1 %v1434_v61 }
 0x2ec   :  { %1341 = vmatprep.subr.bf16.mxu1 %v1569_v1 }
 0x2ef   :  { %1342 = vmatpush3.bf16.msra.mxu1 %v1435_v62 }
 0x2f0   :  { %1343 = vmatprep.subr.bf16.mxu1 %v1569_v1 }
 0x2f3   :  { %1344 = vmatpush3.bf16.msra.mxu1 %v1436_v63 }
 0x2f4   :  { %1345 = vmatprep.subr.bf16.mxu1 %v1569_v1 }
 0x2f7   :  { %1346 = vmatpush3.bf16.msra.mxu1 %v1437_v2 }
 0x2fa   :  { %1348 = vmatmul.mubr.bf16.vlgmr.msra.gmra.mxu1 %v810_v5 }
 0x39a   :  { %v616_v14 = vpop.f32.mrf.mxu1 }
 0x39b   :  { %v617_v15 = vadd.f32 %v1157_v13, %v616_v14 }
 0x39c   :  { %v1309_v16 = vpop.f32.mrf.mxu1 }
 0x39d   :  { %v625_v17 = vrot.slane %v617_v15, 4  ;;  %v639_v18 = vmul.f32 %v617_v15, %v617_v15 }
 0x39e   :  { %v619_v19 = vpop.f32.mrf.mxu1 }
 0x39f   :  { %v626_v20 = vadd.f32 %v625_v17, %v617_v15  ;;  %v641_v21 = vrot.slane %v639_v18, 4  ;;  %v1671_v22 = vadd.f32 %v1157_v13, %v619_v19  ;;  %v1167_v19 = vld [vmem:[#allocation7 + $0x8] ss:$0 sm:$0xff] }
 0x3a0   :  { %v1310_v23 = vpop.f32.mrf.mxu1 }
 0x3a1   :  { %v627_v24 = vrot.slane %v626_v20, 2  ;;  %v642_v25 = vadd.f32 %v641_v21, %v639_v18  ;;  %v631_v26 = vrot.slane %v1671_v22, 4  ;;  %v640_v27 = vmul.f32 %v1671_v22, %v1671_v22 }
 0x3a3   :  { %v628_v28 = vadd.f32 %v627_v24, %v626_v20  ;;  %v643_v29 = vrot.slane %v642_v25, 2  ;;  %v632_v30 = vadd.f32 %v631_v26, %v1671_v22  ;;  %v647_v32 = vrot.slane %v640_v27, 4 }
 0x3a5   :  { %v629_v33 = vrot.slane %v628_v28, 1  ;;  %v644_v34 = vadd.f32 %v643_v29, %v642_v25  ;;  %v633_v35 = vrot.slane %v632_v30, 2  ;;  %v648_v36 = vadd.f32 %v647_v32, %v640_v27 }
 0x3a7   :  { %v630_v37 = vadd.f32 %v629_v33, %v628_v28  ;;  %v645_v38 = vrot.slane %v644_v34, 1  ;;  %v634_v39 = vadd.f32 %v633_v35, %v632_v30  ;;  %v649_v40 = vrot.slane %v648_v36, 2 }
 0x3a9   :  { %v637_v41 = vmul.f32 0.125, %v630_v37  ;;  %v646_v42 = vadd.f32 %v645_v38, %v644_v34  ;;  %v635_v43 = vrot.slane %v634_v39, 1  ;;  %v650_v44 = vadd.f32 %v649_v40, %v648_v36 }
 0x3ab   :  { %v653_v45 = vmul.f32 0.125, %v646_v42  ;;  %v655_v46 = vmul.f32 %v637_v41, %v637_v41  ;;  %v636_v47 = vadd.f32 %v635_v43, %v634_v39  ;;  %v651_v48 = vrot.slane %v650_v44, 1  ;;  %v1446_v42 = vld [vmem:[#allocation6 + $0x178] sm:$0xff]  }
 0x3ac   :  { %v659_v61 = vsub.f32 %v617_v15, %v637_v41 }
 0x3ad   :  { %v657_v49 = vsub.f32 %v653_v45, %v655_v46  ;;  %v638_v50 = vmul.f32 0.125, %v636_v47  ;;  %v652_v51 = vadd.f32 %v651_v48, %v650_v44 }
 0x3af   :  { %v661_v52 = vadd.f32 1e-05, %v657_v49  ;;  %v656_v53 = vmul.f32 %v638_v50, %v638_v50  ;;  %v654_v54 = vmul.f32 0.125, %v652_v51  ;;  %v660_v12 = vsub.f32 %v1671_v22, %v638_v50  ;;  %v1447_v50 = vld [vmem:[#allocation6 + $0x170] sm:$0xff]  }
 0x3b1   :  { %1458 = vrsqrt.f32 %v661_v52  ;;  %v658_v55 = vsub.f32 %v654_v54, %v656_v53  ;;  %v1448_v53 = vld [vmem:[#allocation6 + $0x168] sm:$0xff]  }
 0x3b3   :  { %v662_v56 = vadd.f32 1e-05, %v658_v55  ;;  %v1449_v55 = vld [vmem:[#allocation6 + $0x160] sm:$0xff]  }
 0x3b5   :  { %1460 = vrsqrt.f32 %v662_v56  ;;  %v1450_v56 = vld [vmem:[#allocation6 + $0x158] sm:$0xff]  }
 0x3ba   :  { %v898_v58 = vpop.f32.mrf.mxu1 }
 0x3bb   :  { %v1677_v59 = vadd.f32 %v1177_v57, %v898_v58 }
 0x3bc   :  { %v1349_v60 = vpop.f32.mrf.mxu1 }
 0x3bd   :  { %v907_v62 = vrot.slane %v1677_v59, 4  ;;  %v921_v63 = vmul.f32 %v1677_v59, %v1677_v59 }
 0x3be   :  { %v1459_v0 = vpop.eup %1458  ;;  %v901_v2 = vpop.f32.mrf.mxu1 }
 0x3bf   :  { %v665_v3 = vmul.f32 %v1459_v0, %v659_v61  ;;  %v908_v4 = vadd.f32 %v907_v62, %v1677_v59  ;;  %v923_v5 = vrot.slane %v921_v63, 4  ;;  %v1683_v6 = vadd.f32 %v1177_v57, %v901_v2  ;;  %v1451_v61 = vld [vmem:[#allocation6 + $0x150] sm:$0xff]   ;;  %v1186_v62 = vld [vmem:[#allocation7 + $0xb] ss:$0 sm:$0xff] }
 0x3c0   :  { %v1350_v8 = vpop.f32.mrf.mxu1 }
 0x3c1   :  { %v909_v9 = vrot.slane %v908_v4, 2  ;;  %v924_v31 = vadd.f32 %v923_v5, %v921_v63  ;;  %v913_v10 = vrot.slane %v1683_v6, 4  ;;  %v922_v11 = vmul.f32 %v1683_v6, %v1683_v6 }
 0x3c2   :  { %v671_v13 = vmul.f32 %v1166_v7, %v665_v3  ;;  %v1461_v14 = vpop.eup %1460  ;;  %v1452_v3 = vld [vmem:[#allocation6 + $0x148] sm:$0xff]  }
 0x3c3   :  { %v910_v15 = vadd.f32 %v909_v9, %v908_v4  ;;  %v925_v16 = vrot.slane %v924_v31, 2  ;;  %v914_v17 = vadd.f32 %v913_v10, %v1683_v6  ;;  %v929_v18 = vrot.slane %v922_v11, 4  ;;  %v1187_v4 = vld [vmem:[#allocation7 + $0xc] ss:$0 sm:$0xff] }
 0x3c4   :  { %v666_v20 = vmul.f32 %v1461_v14, %v660_v12  ;;  %v677_v27 = vadd.f32 %v1167_v19, %v671_v13 }
 0x3c5   :  { %v911_v21 = vrot.slane %v910_v15, 1  ;;  %v926_v23 = vadd.f32 %v925_v16, %v924_v31  ;;  %v915_v24 = vrot.slane %v914_v17, 2  ;;  %v930_v25 = vadd.f32 %v929_v18, %v922_v11 }
 0x3c6   :  { %v672_v26 = vmul.f32 %v1166_v7, %v666_v20  ;;  %v679_v37 = vmax.f32 %v677_v27, 0.0  ;;  %v1188_v20 = vld [vmem:[#allocation7 + $0xd] ss:$0 sm:$0xff] }
 0x3c7   :  { %v912_v28 = vadd.f32 %v911_v21, %v910_v15  ;;  %v927_v29 = vrot.slane %v926_v23, 1  ;;  %v916_v30 = vadd.f32 %v915_v24, %v914_v17  ;;  %v931_v32 = vrot.slane %v930_v25, 2 }
 0x3c8   :  { %v678_v22 = vadd.f32 %v1167_v19, %v672_v26 }
 0x3c9   :  { %v919_v33 = vmul.f32 0.125, %v912_v28  ;;  %v928_v34 = vadd.f32 %v927_v29, %v926_v23  ;;  %v917_v35 = vrot.slane %v916_v30, 1  ;;  %v932_v36 = vadd.f32 %v931_v32, %v930_v25 }
 0x3ca   :  { %v680_v38 = vmax.f32 %v678_v22, 0.0 }
 0x3cb   :  { %v935_v39 = vmul.f32 0.125, %v928_v34  ;;  %v937_v40 = vmul.f32 %v919_v33, %v919_v33  ;;  %v918_v41 = vadd.f32 %v917_v35, %v916_v30  ;;  %v933_v43 = vrot.slane %v932_v36, 1 }
 0x3cc   :  { %v698_v44 = vpack.c.bf16 %v680_v38, %v679_v37  ;;  %v941_v57 = vsub.f32 %v1677_v59, %v919_v33  ;;  %v1453_v59 = vld [vmem:[#allocation6 + $0x140] sm:$0xff]  }
 0x3cd   :  { %v939_v45 = vsub.f32 %v935_v39, %v937_v40  ;;  %v920_v46 = vmul.f32 0.125, %v918_v41  ;;  %v934_v47 = vadd.f32 %v933_v43, %v932_v36 }
 0x3ce   :  { %1328 = vmatmul.mubr.bf16.vlgmr.msra.gmra.mxu0 %v698_v44 }
 0x3cf   :  { %v943_v48 = vadd.f32 1e-05, %v939_v45  ;;  %v938_v49 = vmul.f32 %v920_v46, %v920_v46  ;;  %1352 = vmatpush3.bf16.msra.mxu0 %v1446_v42  ;;  %1367 = vmatprep.mubr.msk.bf16.mxu0 %vm1570_vm0, %v1569_v1  ;;  %v936_v51 = vmul.f32 0.125, %v934_v47  ;;  %v942_v63 = vsub.f32 %v1683_v6, %v920_v46  ;;  %v1168_v6 = vld [vmem:[#allocation7 + $0x9] ss:$0 sm:$0xff] }
 0x3d0   :  { %1353 = vmatprep.subr.bf16.mxu0 %v1569_v1 }
 0x3d1   :  { %1462 = vrsqrt.f32 %v943_v48  ;;  %v940_v52 = vsub.f32 %v936_v51, %v938_v49 }
 0x3d3   :  { %1354 = vmatpush3.bf16.msra.mxu0 %v1447_v50  ;;  %v944_v54 = vadd.f32 1e-05, %v940_v52 }
 0x3d4   :  { %1355 = vmatprep.subr.bf16.mxu0 %v1569_v1 }
 0x3d5   :  { %1464 = vrsqrt.f32 %v944_v54 }
 0x3d7   :  { %1356 = vmatpush3.bf16.msra.mxu0 %v1448_v53 }
 0x3d8   :  { %1357 = vmatprep.subr.bf16.mxu0 %v1569_v1 }
 0x3db   :  { %1358 = vmatpush3.bf16.msra.mxu0 %v1449_v55 }
 0x3dc   :  { %1359 = vmatprep.subr.bf16.mxu0 %v1569_v1 }
 0x3de   :  { %v1463_v58 = vpop.eup %1462 }
 0x3df   :  { %v947_v60 = vmul.f32 %v1463_v58, %v941_v57  ;;  %1360 = vmatpush3.bf16.msra.mxu0 %v1450_v56 }
 0x3e0   :  { %1361 = vmatprep.subr.bf16.mxu0 %v1569_v1 }
 0x3e1   :  { %v953_v0 = vmul.f32 %v1186_v62, %v947_v60 }
 0x3e2   :  { %v1465_v2 = vpop.eup %1464 }
 0x3e3   :  { %1362 = vmatpush3.bf16.msra.mxu0 %v1451_v61  ;;  %v948_v5 = vmul.f32 %v1465_v2, %v942_v63  ;;  %v959_v8 = vadd.f32 %v1187_v4, %v953_v0 }
 0x3e4   :  { %1363 = vmatprep.subr.bf16.mxu0 %v1569_v1 }
 0x3e5   :  { %v954_v7 = vmul.f32 %v1186_v62, %v948_v5  ;;  %v961_v31 = vmax.f32 %v959_v8, 0.0 }
 0x3e7   :  { %1364 = vmatpush3.bf16.msra.mxu0 %v1452_v3  ;;  %v960_v9 = vadd.f32 %v1187_v4, %v954_v7 }
 0x3e8   :  { %1365 = vmatprep.subr.bf16.mxu0 %v1569_v1 }
 0x3e9   :  { %v962_v10 = vmax.f32 %v960_v9, 0.0 }
 0x3eb   :  { %1366 = vmatpush3.bf16.msra.mxu0 %v1453_v59  ;;  %v980_v11 = vpack.c.bf16 %v962_v10, %v961_v31 }
 0x3ee   :  { %1368 = vmatmul.mubr.bf16.vlgmr.msra.gmra.mxu0 %v980_v11 }
 0x48e   :  { %v786_v12 = vpop.f32.mrf.mxu0 }
 0x48f   :  { %v787_v13 = vadd.f32 %v1168_v6, %v786_v12 }
 0x490   :  { %v1329_v14 = vpop.f32.mrf.mxu0 }
 0x491   :  { %v1075_v15 = vmul.f32 %v787_v13, %v787_v13 }
 0x492   :  { %v789_v16 = vpop.f32.mrf.mxu0 }
 0x493   :  { %v790_v17 = vadd.f32 %v1168_v6, %v789_v16  ;;  %1077 = vadd.xlane.f32.xlu0 %v1075_v15 }
 0x494   :  { %v1330_v18 = vpop.f32.mrf.mxu0 }
 0x495   :  { %v1076_v19 = vmul.f32 %v790_v17, %v790_v17 }
 0x497   :  { %1079 = vadd.xlane.f32.xlu0 %v1076_v19 }
 0x4ae   :  { %v1068_v21 = vpop.f32.mrf.mxu0 }
 0x4af   :  { %v1069_v1 = vadd.f32 %v1188_v20, %v1068_v21 }
 0x4b0   :  { %v1369_v23 = vpop.f32.mrf.mxu0 }
 0x4b1   :  { %v1087_v24 = vmul.f32 %v1069_v1, %v1069_v1 }
 0x4b2   :  { %v1071_v25 = vpop.f32.mrf.mxu0 }
 0x4b3   :  { %v1072_v26 = vadd.f32 %v1188_v20, %v1071_v25  ;;  %1089 = vadd.xlane.f32.xlu1 %v1087_v24 }
 0x4b4   :  { %v1370_v27 = vpop.f32.mrf.mxu0 }
 0x4b5   :  { %v1088_v28 = vmul.f32 %v1072_v26, %v1072_v26 }
 0x4b7   :  { %1091 = vadd.xlane.f32.xlu1 %v1088_v28 }
 0x51c   :  { %v1078_v29 = vpop.xlane.xlu0 %1077 }
 0x51d   :  { %v1081_v33 = vmax.f32 %v1078_v29, 1e-24 }
 0x520   :  { %v1080_v30 = vpop.xlane.xlu0 %1079 }
 0x521   :  { %v1082_v32 = vmax.f32 %v1080_v30, 1e-24 }
 0x523   :  { %1466 = vrsqrt.f32 %v1082_v32 }
 0x530   :  { %v1467_v37 = vpop.eup %1466 }
 0x531   :  { %v1086_v39 = vmul.f32 %v1467_v37, %v790_v17 }
 0x53c   :  { %v1090_v22 = vpop.xlane.xlu1 %1089 }
 0x53d   :  { %v1093_v34 = vmax.f32 %v1090_v22, 1e-24 }
 0x53f   :  { %1468 = vrsqrt.f32 %v1093_v34 }
 0x540   :  { %v1092_v35 = vpop.xlane.xlu1 %1091  ;;  %1470 = vrsqrt.f32 %v1081_v33 }
 0x541   :  { %v1094_v36 = vmax.f32 %v1092_v35, 1e-24 }
 0x543   :  { %1472 = vrsqrt.f32 %v1094_v36 }
 0x54c   :  { %v1469_v38 = vpop.eup %1468 }
 0x54d   :  { %v1097_v40 = vmul.f32 %v1469_v38, %v1069_v1  ;;  %v1471_v41 = vpop.eup %1470 }
 0x54e   :  { %v1085_v44 = vmul.f32 %v1471_v41, %v787_v13 }
 0x54f   :  { %v1104_v42 = vmul.f32 %v1097_v40, %v1086_v39 }
 0x550   :  { %v1473_v43 = vpop.eup %1472 }
 0x551   :  { %1105 = vadd.xlane.f32.xlu1 %v1104_v42  ;;  %v1098_v45 = vmul.f32 %v1473_v43, %v1072_v26 }
 0x553   :  { %v1099_v46 = vmul.f32 %v1098_v45, %v1085_v44 }
 0x555   :  { %1100 = vadd.xlane.f32.xlu0 %v1099_v46 }
 0x5da   :  { %v1106_v47 = vpop.xlane.xlu1 %1105 }
 0x5db   :  { %v1107_v48 = vmul.f32 2.0, %v1106_v47 }
 0x5dd   :  { %v1108_v51 = vsub.f32 2.0, %v1107_v48 }
 0x5de   :  { %v1101_v49 = vpop.xlane.xlu0 %1100 }
 0x5df   :  { %v1102_v50 = vmul.f32 2.0, %v1101_v49 }
 0x5e1   :  { %v1103_v52 = vsub.f32 2.0, %v1102_v50 }
 0x5e3   :  { %v1109_v53 = vadd.f32 %v1108_v51, %v1103_v52 }
 0x5e5   :  { %1111 = vst.msk [vmem:[%s1708_s4] sm:$0xff] %vm1110_vm1, %v1109_v53 }
 0x5e6   :  { %1116 = vsyncpa [#allocation3], 1 }
 0x5e7   :  { %1117 = vsyncpa [#allocation5], 1 }
 0x5e8   :  { %1118 = vsyncpa [#allocation8], 1 }

</bundles_post_ra>
